<compile_context>
chip_gen: v5e
topology: v5e:2x2
jax: 0.10.0
libtpu: 0.0.40
codegen_flags: <defaults>
</compile_context>

<pallas_src>
import functools

import jax
import jax.numpy as jnp
from jax.experimental import pallas as pl
from jax.experimental.pallas import tpu as pltpu

_LANE = 128      # vreg lane width
_SUBLANE = 8     # f32 sublane width
_MAX_TM = 512    # batch tile (rows): ~85% of HBM roofline for tiled streaming


def _round_up(n, m):
    return (n + m - 1) // m * m


def vnet_kernel(x_ref, w1_ref, b1_ref, w2_ref, b2_ref, o_ref):
    """One batch tile: sigmoid(relu(x @ W1t + b1) @ W2t + b2), all in VMEM."""
    x = x_ref[...]
    h = jnp.dot(x, w1_ref[...], preferred_element_type=jnp.float32) + b1_ref[...]
    h = jnp.maximum(h, 0.0)                                      # ReLU    (VPU)
    out = jnp.dot(h, w2_ref[...], preferred_element_type=jnp.float32) + b2_ref[...]
    o_ref[...] = jax.nn.sigmoid(out).astype(o_ref.dtype)         # sigmoid (EUP)


def prepare_vnet_params(w1, b1, w2, b2):
    """Convert PyTorch-convention params (weights [out, in], biases [out]) into
    the kernel layout ONCE at init:
        w1t [D_in, H], b1 [1, H], w2t [H, D_out_pad], b2 [1, D_out_pad]
    with D_out zero-padded up to a lane-dense multiple of 128."""
    d_out, h = w2.shape
    d_out_pad = _round_up(d_out, _LANE)
    w1t = jnp.asarray(w1, jnp.float32).T                          # [D_in, H]
    b1r = jnp.asarray(b1, jnp.float32).reshape(1, -1)             # [1, H]
    w2t = jnp.zeros((h, d_out_pad), jnp.float32).at[:, :d_out].set(
        jnp.asarray(w2, jnp.float32).T)                           # [H, D_out_pad]
    b2r = jnp.zeros((1, d_out_pad), jnp.float32).at[:, :d_out].set(
        jnp.asarray(b2, jnp.float32))                             # [1, D_out_pad]
    return (w1t, b1r, w2t, b2r), d_out


@functools.partial(jax.jit, static_argnames=("d_out",))
def vnet_forward(x, w1t, b1r, w2t, b2r, *, d_out):
    """x: [N, D_in] f32; params already in kernel layout (prepare_vnet_params)."""
    n, d_in = x.shape
    h = w1t.shape[1]
    d_out_pad = w2t.shape[1]

    # Row tile: whole batch (rounded to the sublane width) for small N,
    # otherwise 512-row tiles so the grid software-pipelines HBM<->VMEM.
    tm = _MAX_TM if n >= _MAX_TM else _round_up(n, _SUBLANE)
    n_pad = _round_up(n, tm)
    if n_pad != n:
        x = jnp.pad(x, ((0, n_pad - n), (0, 0)))   # zero rows, sliced off below
    grid = (n_pad // tm,)

    cost = pl.CostEstimate(
        flops=2 * n_pad * (d_in * h + h * d_out_pad),
        transcendentals=n_pad * d_out_pad,          # sigmoid exp
        bytes_accessed=4 * (n_pad * d_in + d_in * h + h
                            + h * d_out_pad + d_out_pad + n_pad * d_out_pad),
    )

    out = pl.pallas_call(
        vnet_kernel,
        out_shape=jax.ShapeDtypeStruct((n_pad, d_out_pad), jnp.float32),
        grid=grid,
        in_specs=[
            pl.BlockSpec((tm, d_in), lambda i: (i, 0)),          # batch-tiled x
            pl.BlockSpec((d_in, h), lambda i: (0, 0)),           # VMEM-resident
            pl.BlockSpec((1, h), lambda i: (0, 0)),
            pl.BlockSpec((h, d_out_pad), lambda i: (0, 0)),
            pl.BlockSpec((1, d_out_pad), lambda i: (0, 0)),
        ],
        out_specs=pl.BlockSpec((tm, d_out_pad), lambda i: (i, 0)),
        compiler_params=pltpu.CompilerParams(
            dimension_semantics=("parallel",)),
        cost_estimate=cost,
    )(x, w1t, b1r, w2t, b2r)

    # Slice away row padding and the zero-padded output columns.
    return out[:n, :d_out]


def init_linear_params(key, in_features, out_features):
    """Deterministic init matching nn.Linear's uniform(-1/sqrt(fan_in), +)."""
    kw, kb = jax.random.split(key)
    bound = 1.0 / (in_features ** 0.5)
    w = jax.random.uniform(kw, (out_features, in_features),
                           minval=-bound, maxval=bound, dtype=jnp.float32)
    b = jax.random.uniform(kb, (out_features,),
                           minval=-bound, maxval=bound, dtype=jnp.float32)
    return w, b


if __name__ == "__main__":
    # VNet(input=32, hidden1=64, output=1) applied to a batch of 8 samples.
    N, D_IN, H1, D_OUT = 8, 32, 64, 1

    key = jax.random.PRNGKey(0)
    k_x, k_l1, k_l2 = jax.random.split(key, 3)

    x = jax.random.normal(k_x, (N, D_IN), dtype=jnp.float32)
    w1, b1 = init_linear_params(k_l1, D_IN, H1)
    w2, b2 = init_linear_params(k_l2, H1, D_OUT)

    # One-time layout conversion (transpose + lane-dense zero-padding).
    (w1t, b1r, w2t, b2r), d_out = prepare_vnet_params(w1, b1, w2, b2)

    out = vnet_forward(x, w1t, b1r, w2t, b2r, d_out=d_out)
    out = jax.block_until_ready(out)

    # Plain-JAX reference (PyTorch VNet.forward semantics).
    ref = jax.nn.sigmoid(jnp.maximum(x @ w1.T + b1, 0.0) @ w2.T + b2)
    assert out.shape == (N, D_OUT)
    assert jnp.allclose(out, ref, atol=1e-5, rtol=1e-5)

    print("KERNEL_OK")
</pallas_src>

<mosaic_0001>
module attributes {stable_mosaic.version = 11 : i64} {
  func.func @vnet_kernel(%arg0: i32, %arg1: memref<8x32xf32, #tpu.memory_space<vmem>>, %arg2: memref<32x64xf32, #tpu.memory_space<vmem>>, %arg3: memref<1x64xf32, #tpu.memory_space<vmem>>, %arg4: memref<64x128xf32, #tpu.memory_space<vmem>>, %arg5: memref<1x128xf32, #tpu.memory_space<vmem>>, %arg6: memref<8x128xf32, #tpu.memory_space<vmem>>) attributes {dimension_semantics = [#tpu.dimension_semantics<parallel>], iteration_bounds = array<i64: 1>, scalar_prefetch = 0 : i64, scratch_operands = 0 : i64, tpu.core_type = #tpu.core_type<tc>, window_params = [{transform_indices = @transform_0, window_bounds = array<i64: 8, 32>}, {pipeline_mode = #tpu.pipeline_mode<synchronous>, transform_indices = @transform_1, window_bounds = array<i64: 32, 64>}, {pipeline_mode = #tpu.pipeline_mode<synchronous>, transform_indices = @transform_2, window_bounds = array<i64: 1, 64>}, {pipeline_mode = #tpu.pipeline_mode<synchronous>, transform_indices = @transform_3, window_bounds = array<i64: 64, 128>}, {pipeline_mode = #tpu.pipeline_mode<synchronous>, transform_indices = @transform_4, window_bounds = array<i64: 1, 128>}, {transform_indices = @transform_5, window_bounds = array<i64: 8, 128>}]} {
    %c0 = arith.constant 0 : index
    %c0_0 = arith.constant 0 : index
    %0 = vector.load %arg1[%c0, %c0_0] : memref<8x32xf32, #tpu.memory_space<vmem>>, vector<8x32xf32>
    %c0_1 = arith.constant 0 : index
    %c0_2 = arith.constant 0 : index
    %1 = vector.load %arg2[%c0_1, %c0_2] : memref<32x64xf32, #tpu.memory_space<vmem>>, vector<32x64xf32>
    %cst = arith.constant dense<0.000000e+00> : vector<8x64xf32>
    %2 = tpu.matmul %0, %1, %cst {dimension_numbers = #tpu.dot_dimension_numbers<[1], [0], [0], [1], [0, 0, 1, 1], [], []>} : vector<8x32xf32>, vector<32x64xf32>, vector<8x64xf32> -> vector<8x64xf32>
    %c0_3 = arith.constant 0 : index
    %c0_4 = arith.constant 0 : index
    %3 = vector.load %arg3[%c0_3, %c0_4] : memref<1x64xf32, #tpu.memory_space<vmem>>, vector<1x64xf32>
    %4 = vector.broadcast %3 : vector<1x64xf32> to vector<8x64xf32>
    %5 = arith.addf %2, %4 : vector<8x64xf32>
    %cst_5 = arith.constant 0.000000e+00 : f32
    %6 = vector.broadcast %cst_5 : f32 to vector<8x64xf32>
    %7 = arith.maximumf %5, %6 : vector<8x64xf32>
    %c0_6 = arith.constant 0 : index
    %c0_7 = arith.constant 0 : index
    %8 = vector.load %arg4[%c0_6, %c0_7] : memref<64x128xf32, #tpu.memory_space<vmem>>, vector<64x128xf32>
    %cst_8 = arith.constant dense<0.000000e+00> : vector<8x128xf32>
    %9 = tpu.matmul %7, %8, %cst_8 {dimension_numbers = #tpu.dot_dimension_numbers<[1], [0], [0], [1], [0, 0, 1, 1], [], []>} : vector<8x64xf32>, vector<64x128xf32>, vector<8x128xf32> -> vector<8x128xf32>
    %c0_9 = arith.constant 0 : index
    %c0_10 = arith.constant 0 : index
    %10 = vector.load %arg5[%c0_9, %c0_10] : memref<1x128xf32, #tpu.memory_space<vmem>>, vector<1x128xf32>
    %11 = vector.broadcast %10 : vector<1x128xf32> to vector<8x128xf32>
    %12 = arith.addf %9, %11 : vector<8x128xf32>
    %13 = arith.negf %12 : vector<8x128xf32>
    %14 = math.exp %13 : vector<8x128xf32>
    %cst_11 = arith.constant 1.000000e+00 : f32
    %15 = vector.broadcast %cst_11 : f32 to vector<8x128xf32>
    %16 = arith.addf %15, %14 : vector<8x128xf32>
    %17 = arith.divf %15, %16 : vector<8x128xf32>
    %c0_12 = arith.constant 0 : index
    %c0_13 = arith.constant 0 : index
    %18 = vector.load %arg6[%c0_12, %c0_13] : memref<8x128xf32, #tpu.memory_space<vmem>>, vector<8x128xf32>
    tpu.vector_store %arg6[%c0_12, %c0_13], %17 {strides = array<i32>} : memref<8x128xf32, #tpu.memory_space<vmem>>, vector<8x128xf32>,
    return
  }
  func.func @transform_0(%arg0: i32) -> (i32, i32) {
    %c0_i32 = arith.constant 0 : i32
    %c0_i32_0 = arith.constant 0 : i32
    return %arg0, %c0_i32 : i32, i32
  }
  func.func @transform_1(%arg0: i32) -> (i32, i32) {
    %c0_i32 = arith.constant 0 : i32
    %c0_i32_0 = arith.constant 0 : i32
    %c0_i32_1 = arith.constant 0 : i32
    return %c0_i32, %c0_i32_0 : i32, i32
  }
  func.func @transform_2(%arg0: i32) -> (i32, i32) {
    %c0_i32 = arith.constant 0 : i32
    %c0_i32_0 = arith.constant 0 : i32
    %c0_i32_1 = arith.constant 0 : i32
    return %c0_i32, %c0_i32_0 : i32, i32
  }
  func.func @transform_3(%arg0: i32) -> (i32, i32) {
    %c0_i32 = arith.constant 0 : i32
    %c0_i32_0 = arith.constant 0 : i32
    %c0_i32_1 = arith.constant 0 : i32
    return %c0_i32, %c0_i32_0 : i32, i32
  }
  func.func @transform_4(%arg0: i32) -> (i32, i32) {
    %c0_i32 = arith.constant 0 : i32
    %c0_i32_0 = arith.constant 0 : i32
    %c0_i32_1 = arith.constant 0 : i32
    return %c0_i32, %c0_i32_0 : i32, i32
  }
  func.func @transform_5(%arg0: i32) -> (i32, i32) {
    %c0_i32 = arith.constant 0 : i32
    %c0_i32_0 = arith.constant 0 : i32
    return %arg0, %c0_i32 : i32, i32
  }
}

</mosaic_0001>

<bundles_post_ra>
// kernel: vnet_forward.1
= control target key start
LH: loop header
LB: loop body
LE: loop exit
PB: predicated region body
PF: predicated region fallthrough
CT: control target
= control target key end

     0   :  { %10 = vsyncpa [#allocation3], 0  ;;  %s304_s0 = inlined_call_operand.hbm [shape: f32[8,32], index: 0, kind: input, shape index: {}]   ;;  %s305_s1 = inlined_call_operand.hbm [shape: f32[32,64], index: 1, kind: input, shape index: {}]   ;;  %s306_s2 = inlined_call_operand.vmem [shape: f32[1,64], index: 2, kind: input, shape index: {}]   ;;  %s307_s3 = inlined_call_operand.hbm [shape: f32[64,128], index: 3, kind: input, shape index: {}]   ;;  %s308_s4 = inlined_call_operand.vmem [shape: f32[1,128], index: 4, kind: input, shape index: {}]   ;;  %s309_s5 = inlined_call_operand.vmem [shape: f32[8,128], index: 5, kind: output, shape index: {}]  }
   0x1   :  { %11 = vsyncpa [#allocation5], 0  ;;  %s27_s20 = sshll.u32 %s305_s1, 4  ;;  %s251_s21 = smov [#allocation4]   ;;  %s28_s20 = int_to_ptr.hbm [resolvable:$true] %s27_s20 }
   0x2   :  { %s29_s22 = sshll.u32 %s251_s21, 4  ;;  %s17_s25 = sshll.u32 %s304_s0, 4  ;;  %s30_s22 = int_to_ptr.vmem [resolvable:$true] %s29_s22  ;;  %s18_s25 = int_to_ptr.hbm [resolvable:$true] %s17_s25 }
   0x3   :  { %s252_s26 = smov 128   ;;  %s253_s27 = smov 8  }
   0x4   :  { %35 = dma.hbm_to_vmem [thread:$0]  %s28_s20, 512, %s30_s22, [#allocation5], %s252_s26, %s252_s26, %s253_s27  }
   0x5   :  { %s254_s28 = smov [#allocation2]   ;;  %s42_s7 = sshll.u32 %s307_s3, 4  ;;  %s43_s7 = int_to_ptr.hbm [resolvable:$true] %s42_s7 }
   0x6   :  { %s19_s29 = sshll.u32 %s254_s28, 4  ;;  %s255_s1 = smov [#allocation6]   ;;  %s20_s29 = int_to_ptr.vmem [resolvable:$true] %s19_s29 }
   0x7   :  { %22 = dma.hbm_to_vmem [thread:$0]  %s18_s25, 128, %s20_s29, [#allocation3]  }
   0x8   :  { %s44_s8 = sshll.u32 %s255_s1, 4  ;;  %s45_s8 = int_to_ptr.vmem [resolvable:$true] %s44_s8 }
   0x9   :  { %50 = dma.hbm_to_vmem [thread:$0]  %s43_s7, 1024, %s45_s8, [#allocation5], %s252_s26, %s252_s26, %s253_s27  }
   0xa   :  { %247 = dma.done.wait [#allocation3], 128  }
   0xb   :  { %248 = vsyncadd [#allocation3], 4294967168 }
   0xc   :  { %249 = dma.done.wait [#allocation5], 1536  }
   0xd   :  { %250 = vsyncadd [#allocation5], 4294965760  ;;  %v69_v0 = vld [vmem:[#allocation4 + $0x18] sm:$0xff]  ;;  %v68_v1 = vld [vmem:[#allocation4 + $0x10] sm:$0xff]  ;;  %vm74_vm0 = vcmask 261120   ;;  %vm111_vm1 = vcmask 523264  }
   0xe   :  { %90 = vmatpush.msra.mxu0 %v69_v0  ;;  %v106_v2 = vld [vmem:[#allocation6 + $0x38] sm:$0xff]  ;;  %v67_v3 = vld [vmem:[#allocation4 + $0x8] sm:$0xff]  ;;  %v105_v4 = vld [vmem:[#allocation6 + $0x30] sm:$0xff] }
   0xf   :  { %123 = vmatpush.msra.mxu1 %v106_v2  ;;  %v104_v5 = vld [vmem:[#allocation6 + $0x28] sm:$0xff]  ;;  %v66_v6 = vld [vmem:[#allocation4] sm:$0xff]  ;;  %v65_v7 = vld [vmem:[#allocation2] sm:$0xff] }
  0x10   :  { %91 = vmatpush.msra.mxu0 %v68_v1  ;;  %v103_v8 = vld [vmem:[#allocation6 + $0x20] sm:$0xff]  ;;  %v102_v9 = vld [vmem:[#allocation6 + $0x18] sm:$0xff]  ;;  %v101_v10 = vld [vmem:[#allocation6 + $0x10] sm:$0xff] }
  0x11   :  { %124 = vmatpush.msra.mxu1 %v105_v4  ;;  %v100_v11 = vld [vmem:[#allocation6 + $0x8] sm:$0xff]  ;;  %v99_v12 = vld [vmem:[#allocation6] sm:$0xff]  ;;  %v169_v13 = vld [vmem:[%s306_s2] ss:$0 sm:$0xff] }
  0x12   :  { %92 = vmatpush.msra.mxu0 %v67_v3  ;;  %v170_v17 = vld [vmem:[%s308_s4] ss:$0 sm:$0xff] }
  0x13   :  { %125 = vmatpush.msra.mxu1 %v104_v5 }
  0x14   :  { %93 = vmatpush.msra.mxu0 %v66_v6 }
  0x15   :  { %161 = vmatmul.msk.f32.vlgmr.msra.gmra.mxu0 %vm74_vm0, %v65_v7  ;;  %126 = vmatpush.msra.mxu1 %v103_v8 }
  0x17   :  { %127 = vmatpush.msra.mxu1 %v102_v9 }
  0x19   :  { %128 = vmatpush.msra.mxu1 %v101_v10 }
  0x1b   :  { %129 = vmatpush.msra.mxu1 %v100_v11 }
  0x1d   :  { %130 = vmatpush.msra.mxu1 %v99_v12 }
  0x92   :  { %v95_v14 = vpop.f32.mrf.mxu0 }
  0x93   :  { %v96_v15 = vadd.f32 %v169_v13, %v95_v14 }
  0x95   :  { %v98_v16 = vmax.f32 %v96_v15, 0.0 }
  0x97   :  { %162 = vmatmul.msk.f32.vlgmr.msra.gmra.mxu1 %vm111_vm1, %v98_v16 }
 0x114   :  { %v132_v18 = vpop.f32.mrf.mxu1 }
 0x115   :  { %v133_v19 = vadd.f32 %v170_v17, %v132_v18 }
 0x117   :  { %v163_v20 = vmul.f32 -1.442695, %v133_v19 }
 0x119   :  { %171 = vpow2.f32 %v163_v20 }
 0x11f   :  { %v172_v21 = vpop.eup %171 }
 0x120   :  { %v138_v22 = vadd.f32 1.0, %v172_v21 }
 0x122   :  { %173 = vrcp.f32 %v138_v22  ;;  %v150_v26 = vand.u32 2147483648, %v138_v22  ;;  %v148_v28 = vand.u32 2147483647, %v138_v22  ;;  %vm144_vm3 = vweird.f32 %v138_v22 }
 0x124   :  { %v151_v30 = vor.u32 1.1754944e-38, %v150_v26  ;;  %vm149_vm5 = vcmp.eq.f32.partialorder %v148_v28, 8.507059e+37 }
 0x128   :  { %v174_v23 = vpop.eup %173 }
 0x129   :  { %v140_v24 = vmul.f32 %v174_v23, %v138_v22  ;;  %vm145_vm2 = vweird.f32 %v174_v23 }
 0x12a   :  { %vm146_vm4 = vmor %vm144_vm3, %vm145_vm2 }
 0x12b   :  { %v141_v25 = vsub.f32 1.0, %v140_v24 }
 0x12d   :  { %v142_v27 = vmul.f32 %v174_v23, %v141_v25 }
 0x12f   :  { %v143_v29 = vadd.f32 %v174_v23, %v142_v27 }
 0x131   :  { %v147_v31 = vsel %vm146_vm4, %v174_v23, %v143_v29 }
 0x132   :  { %v152_v32 = vsel %vm149_vm5, %v151_v30, %v147_v31 }
 0x133   :  { %154 = vst [vmem:[%s309_s5] sm:$0xff] %v152_v32 }
 0x134   :  { %159 = vsyncpa [#allocation3], 1 }
 0x135   :  { %160 = vsyncpa [#allocation5], 1 }

</bundles_post_ra>
